<compile_context>
chip_gen: v6e
topology: v6e:2x2x1
jax: 0.10.0
libtpu: 0.0.40
codegen_flags: <defaults>
</compile_context>

<pallas_src>
import functools

import jax
import jax.numpy as jnp
from jax.experimental import pallas as pl
from jax.experimental.pallas import tpu as pltpu


# ---------------------------------------------------------------------------
# Pallas kernel
# ---------------------------------------------------------------------------
def _layernorm2d_kernel(x_ref, w_ref, b_ref, o_ref, *, eps):
    """x_ref/o_ref: (1, C, Thw); w_ref/b_ref: (C, 1)."""
    x = x_ref[0].astype(jnp.float32)                          # (C, Thw)
    c = x.shape[0]
    inv_c = 1.0 / c
    mu = jnp.sum(x, axis=0, keepdims=True) * inv_c            # (1, Thw)  XLU reduce
    xc = x - mu
    var = jnp.sum(xc * xc, axis=0, keepdims=True) * inv_c     # biased, matches torch
    inv_std = jax.lax.rsqrt(var + eps)                        # EUP slot
    y = xc * inv_std
    o_ref[0] = (y * w_ref[...] + b_ref[...]).astype(o_ref.dtype)


# ---------------------------------------------------------------------------
# Wrapper
# ---------------------------------------------------------------------------
def _pick_hw_tile(hw, c, itemsize):
    """Largest lane-dense (multiple-of-128) tile that divides HW and keeps the
    per-block footprint a few MiB.  Falls back to the full HW extent (legal as
    a full-array dim even when HW is not a multiple of 128)."""
    budget = max(128, (4 << 20) // max(c * itemsize, 1))
    for t in (16384, 8192, 4096, 2048, 1024, 512, 256, 128):
        if t <= budget and hw % t == 0:
            return t
    return hw


def layer_norm_2d(x_nchw, weight, bias, *, eps=1e-6):
    n, c, h, w = x_nchw.shape
    hw = h * w
    itemsize = jnp.dtype(x_nchw.dtype).itemsize
    tile = _pick_hw_tile(hw, c, itemsize)

    x3 = x_nchw.reshape(n, c, hw)                  # free view: NCHW is contiguous
    w_col = weight.reshape(c, 1).astype(jnp.float32)
    b_col = bias.reshape(c, 1).astype(jnp.float32)

    kernel = functools.partial(_layernorm2d_kernel, eps=float(eps))

    cost = pl.CostEstimate(
        flops=10 * n * c * hw,                     # sub/mul/add chain per element
        transcendentals=n * hw,                    # one rsqrt per pixel
        bytes_accessed=(2 * n * c * hw) * itemsize + 2 * c * 4,
    )

    out = pl.pallas_call(
        kernel,
        out_shape=jax.ShapeDtypeStruct((n, c, hw), x_nchw.dtype),
        grid=(n, hw // tile),
        in_specs=[
            pl.BlockSpec((1, c, tile), lambda i, j: (i, 0, j)),
            pl.BlockSpec((c, 1), lambda i, j: (0, 0)),   # resident: same block every step
            pl.BlockSpec((c, 1), lambda i, j: (0, 0)),
        ],
        out_specs=pl.BlockSpec((1, c, tile), lambda i, j: (i, 0, j)),
        compiler_params=pltpu.CompilerParams(
            dimension_semantics=("parallel", "parallel")),
        cost_estimate=cost,
    )(x3, w_col, b_col)
    return out.reshape(n, c, h, w)


# ---------------------------------------------------------------------------
# Pure-JAX reference (mirrors LayerNormFunction.forward)
# ---------------------------------------------------------------------------
def _ref_layer_norm_2d(x, weight, bias, eps=1e-6):
    mu = jnp.mean(x, axis=1, keepdims=True)
    var = jnp.mean((x - mu) ** 2, axis=1, keepdims=True)
    y = (x - mu) / jnp.sqrt(var + eps)
    c = x.shape[1]
    return weight.reshape(1, c, 1, 1) * y + bias.reshape(1, c, 1, 1)


# ---------------------------------------------------------------------------
if __name__ == "__main__":
    key = jax.random.PRNGKey(0)
    k_x, k_w, k_b = jax.random.split(key, 3)

    N, C, H, W = 2, 32, 16, 16
    x = jax.random.normal(k_x, (N, C, H, W), jnp.float32)
    weight = 1.0 + 0.1 * jax.random.normal(k_w, (C,), jnp.float32)
    bias = 0.1 * jax.random.normal(k_b, (C,), jnp.float32)

    out = layer_norm_2d(x, weight, bias, eps=1e-6)
    out = jax.block_until_ready(out)

    ref = jax.block_until_ready(_ref_layer_norm_2d(x, weight, bias, eps=1e-6))
    assert out.shape == (N, C, H, W), out.shape
    max_err = float(jnp.max(jnp.abs(out - ref)))
    assert jnp.allclose(out, ref, rtol=1e-4, atol=1e-5), max_err

    print("KERNEL_OK")
</pallas_src>

<mosaic_0001>
module attributes {stable_mosaic.version = 11 : i64} {
  func.func @_layernorm2d_kernel(%arg0: i32, %arg1: i32, %arg2: memref<1x32x256xf32, #tpu.memory_space<vmem>>, %arg3: memref<32x1xf32, #tpu.memory_space<vmem>>, %arg4: memref<32x1xf32, #tpu.memory_space<vmem>>, %arg5: memref<1x32x256xf32, #tpu.memory_space<vmem>>) attributes {dimension_semantics = [#tpu.dimension_semantics<parallel>, #tpu.dimension_semantics<parallel>], iteration_bounds = array<i64: 2, 1>, scalar_prefetch = 0 : i64, scratch_operands = 0 : i64, tpu.core_type = #tpu.core_type<tc>, window_params = [{transform_indices = @transform_0, window_bounds = array<i64: 1, 32, 256>}, {pipeline_mode = #tpu.pipeline_mode<synchronous>, transform_indices = @transform_1, window_bounds = array<i64: 32, 1>}, {pipeline_mode = #tpu.pipeline_mode<synchronous>, transform_indices = @transform_2, window_bounds = array<i64: 32, 1>}, {transform_indices = @transform_3, window_bounds = array<i64: 1, 32, 256>}]} {
    %c0 = arith.constant 0 : index
    %c0_0 = arith.constant 0 : index
    %c0_1 = arith.constant 0 : index
    %0 = vector.load %arg2[%c0, %c0_0, %c0_1] : memref<1x32x256xf32, #tpu.memory_space<vmem>>, vector<1x32x256xf32>
    %1 = vector.shape_cast %0 : vector<1x32x256xf32> to vector<32x256xf32>
    %cst = arith.constant dense<0.000000e+00> : vector<256xf32>
    %2 = vector.multi_reduction <add>, %1, %cst [0] : vector<32x256xf32> to vector<256xf32>
    %3 = vector.shape_cast %2 : vector<256xf32> to vector<1x256xf32>
    %cst_2 = arith.constant 3.125000e-02 : f32
    %4 = vector.broadcast %cst_2 : f32 to vector<1x256xf32>
    %5 = arith.mulf %3, %4 : vector<1x256xf32>
    %6 = vector.broadcast %5 : vector<1x256xf32> to vector<32x256xf32>
    %7 = arith.subf %1, %6 : vector<32x256xf32>
    %8 = arith.mulf %7, %7 : vector<32x256xf32>
    %cst_3 = arith.constant dense<0.000000e+00> : vector<256xf32>
    %9 = vector.multi_reduction <add>, %8, %cst_3 [0] : vector<32x256xf32> to vector<256xf32>
    %10 = vector.shape_cast %9 : vector<256xf32> to vector<1x256xf32>
    %cst_4 = arith.constant 3.125000e-02 : f32
    %11 = vector.broadcast %cst_4 : f32 to vector<1x256xf32>
    %12 = arith.mulf %10, %11 : vector<1x256xf32>
    %cst_5 = arith.constant 9.99999997E-7 : f32
    %13 = vector.broadcast %cst_5 : f32 to vector<1x256xf32>
    %14 = arith.addf %12, %13 : vector<1x256xf32>
    %15 = math.rsqrt %14 : vector<1x256xf32>
    %16 = vector.broadcast %15 : vector<1x256xf32> to vector<32x256xf32>
    %17 = arith.mulf %7, %16 : vector<32x256xf32>
    %c0_6 = arith.constant 0 : index
    %c0_7 = arith.constant 0 : index
    %18 = vector.load %arg3[%c0_6, %c0_7] : memref<32x1xf32, #tpu.memory_space<vmem>>, vector<32x1xf32>
    %19 = vector.broadcast %18 : vector<32x1xf32> to vector<32x256xf32>
    %20 = arith.mulf %17, %19 : vector<32x256xf32>
    %c0_8 = arith.constant 0 : index
    %c0_9 = arith.constant 0 : index
    %21 = vector.load %arg4[%c0_8, %c0_9] : memref<32x1xf32, #tpu.memory_space<vmem>>, vector<32x1xf32>
    %22 = vector.broadcast %21 : vector<32x1xf32> to vector<32x256xf32>
    %23 = arith.addf %20, %22 : vector<32x256xf32>
    %c0_10 = arith.constant 0 : index
    %c0_11 = arith.constant 0 : index
    %c0_12 = arith.constant 0 : index
    %24 = vector.load %arg5[%c0_10, %c0_11, %c0_12] : memref<1x32x256xf32, #tpu.memory_space<vmem>>, vector<1x32x256xf32>
    %25 = vector.shape_cast %24 : vector<1x32x256xf32> to vector<32x256xf32>
    %26 = vector.shape_cast %23 : vector<32x256xf32> to vector<1x32x256xf32>
    tpu.vector_store %arg5[%c0_10, %c0_11, %c0_12], %26 {strides = array<i32>} : memref<1x32x256xf32, #tpu.memory_space<vmem>>, vector<1x32x256xf32>,
    return
  }
  func.func @transform_0(%arg0: i32, %arg1: i32) -> (i32, i32, i32) {
    %c0_i32 = arith.constant 0 : i32
    %c0_i32_0 = arith.constant 0 : i32
    return %arg0, %c0_i32, %arg1 : i32, i32, i32
  }
  func.func @transform_1(%arg0: i32, %arg1: i32) -> (i32, i32) {
    %c0_i32 = arith.constant 0 : i32
    %c0_i32_0 = arith.constant 0 : i32
    %c0_i32_1 = arith.constant 0 : i32
    return %c0_i32, %c0_i32_0 : i32, i32
  }
  func.func @transform_2(%arg0: i32, %arg1: i32) -> (i32, i32) {
    %c0_i32 = arith.constant 0 : i32
    %c0_i32_0 = arith.constant 0 : i32
    %c0_i32_1 = arith.constant 0 : i32
    return %c0_i32, %c0_i32_0 : i32, i32
  }
  func.func @transform_3(%arg0: i32, %arg1: i32) -> (i32, i32, i32) {
    %c0_i32 = arith.constant 0 : i32
    %c0_i32_0 = arith.constant 0 : i32
    return %arg0, %c0_i32, %arg1 : i32, i32, i32
  }
}

</mosaic_0001>

<bundles_post_ra>
// kernel: tpu_custom_call.1
= control target key start
LH: loop header
LB: loop body
LE: loop exit
PB: predicated region body
PF: predicated region fallthrough
CT: control target
= control target key end

     0   :  { %8 = vsyncpa [#allocation3], 0  ;;  %s871_s0 = inlined_call_operand.hbm [shape: f32[2,32,256], index: 0, kind: input, shape index: {}]   ;;  %s872_s1 = inlined_call_operand.vmem [shape: f32[32,1], index: 1, kind: input, shape index: {}]   ;;  %s873_s2 = inlined_call_operand.vmem [shape: f32[32,1], index: 2, kind: input, shape index: {}]   ;;  %s874_s3 = inlined_call_operand.hbm [shape: f32[2,32,256], index: 3, kind: output, shape index: {}]  }
   0x1   :  { %10 = vsyncpa [#allocation3 + $0x1], 0 }
   0x2   :  { %11 = vsyncpa [#allocation4], 0 }
   0x3   :  { %13 = vsyncpa [#allocation4 + $0x1], 0  ;;  %s687_s12 = smov 0   ;;  %s689_s13 = smov 0  }
   0x4   :  { %s691_s14 = smov 0   ;;  %s693_s15 = smov 0  }
   0x5   :  { %s695_s16 = smov 0   ;;  %s697_s17 = smov 0  }
   0x6 LB: > { %s460_s18 = sadd.s32 4294967295, %s658_s17   ;;  %s461_s19 = sadd.s32 4294967294, %s658_s17   ;;  %s658_s17 = sphi %s697_s17, %s19_s17   ;;  %s654_s16 = sphi %s695_s16, %s885_s16   ;;  %s650_s15 = sphi %s693_s15, %s884_s15   ;;  %s646_s14 = sphi %s691_s14, %s883_s14   ;;  %s642_s13 = sphi %s689_s13, %s882_s13   ;;  %s638_s12 = sphi %s687_s12, %s881_s12  }
   0x7   : > { %s31_s20 = sadd.s32 1, %s654_s16  ;;  %s40_s21 = sadd.s32 1, %s646_s14 }
   0x8   : > { %p33_p0 = scmp.ge.s32.totalorder %s31_s20, 2  ;;  %p47_p1 = scmp.ne.s32.totalorder %s646_s14, %s642_s13 }
   0x9   : > { %p48_p2 = scmp.eq.s32.totalorder %s658_s17, 0  ;;  %p53_p3 = scmp.ne.s32.totalorder %s642_s13, %s638_s12 }
   0xa   : > { %s887_s20 = smov (%p33_p0, %s31_s20), 0  ;;  %p54_p5 = scmp.eq.s32.totalorder %s460_s18, 0 }
   0xb   : > { %p728_p4 = por %p48_p2, %p47_p1  ;;  %s35_s23 = ssub.s32 %s654_s16, %s887_s20 }
   0xc   : > { %p121_p6 = scmp.eq.s32.totalorder %s460_s18, 1  ;;  %p38_p7 = scmp.eq.s32.totalorder %s35_s23, 0 }
   0xd   : > { %p734_p8 = por %p54_p5, %p53_p3  ;;  %p127_p10 = scmp.eq.s32.totalorder %s461_s19, 1 }
   0xe   : > { %p738_p9 = por %p121_p6, %p47_p1  ;;  %p489_p13 = scmp.lt.s32.totalorder %s658_s17, 2 }
   0xf   : > { %s743_s26 = scalar_select %p38_p7, %s646_s14, %s40_s21  }
  0x10   : > { %p745_p11 = por %p127_p10, %p53_p3  ;;  %s153_s28 = sand.u32 1, %s646_s14  }
  0x11   : > { %s464_s29 = sshll.u32 %s153_s28, 6  ;;  %s475_s30 = sshll.u32 %s654_s16, 10 }
  0x12   : > { %s165_s6 = scalar_lea.hbm %s871_s0, %s475_s30  ;;  %s157_s7 = scalar_lea.vmem [#allocation2], %s464_s29 }
  0x13   : > { %s166_s8 = sshll.u32 %s157_s7, 4  ;;  %p758_p0 = pnand %p489_p13, %p728_p4  ;;  %s167_s8 = int_to_ptr.vmem [resolvable:$true] %s166_s8 }
  0x14   : > { %p467_p1 = scmp.ge.s32.totalorder %s658_s17, 1  ;;  %s154_s10 = scalar_lea.sflag [#allocation3], %s153_s28 }
  0x15   : > { %p552_p2 = pneg %p758_p0  ;;  %s563_s11 = scalar_lea.vmem %s167_s8, 1024 }
  0x16   : > { %p564_p3 = scmp.ne.s32.totalorder %s167_s8, %s563_s11  ;;  %s660_s18 = smov [#allocation2]  }
  0x17   : > { %s568_s19 = sshll.u32 %s660_s18, 4  ;;  %s569_s19 = int_to_ptr.vmem [resolvable:$false] %s568_s19 }
  0x18   : > { %p566_p5 = pnand %p564_p3, %p552_p2  ;;  %s570_s21 = scalar_lea.vmem %s569_s19, 2048 }
  0x19   : > { %p571_p7 = scmp.lt.s32.totalorder %s167_s8, %s569_s19  ;;  %p572_p10 = scmp.lt.s32.totalorder %s570_s21, %s563_s11 }
  0x1a   : > { %p567_p6 = pneg %p566_p5 }
  0x1b   : > { %p573_p12 = por %p572_p10, %p571_p7 }
  0x1d   : > { %p574_p4 = pnand %p573_p12, %p567_p6 }
  0x1f   : > { %577 = shalt.err (!%p574_p4)
}
  0x20   : > { %s661_s22 = smov 256   ;;  %s662_s23 = smov 16  }
  0x21   : > { %484 = dma.hbm_to_vmem [thread:$0]  (!%p758_p0), %s165_s6, 1024, %s167_s8, %s154_s10, %s661_s22, %s661_s22, %s662_s23  }
  0x22   : > { %p174_p13 = scmp.lt.s32.totalorder %s658_s17, 3 }
  0x24   : > { %p175_p2 = pnand %p467_p1, %p174_p13 }
  0x25   : > { %s771_s28 = sand.u32 (!%p175_p2), 1, %s642_s13  }
  0x26   : > { %178 = sbr.rel (%p175_p2) target bundleno = 199 (0xc7), region = 32  ;;  %s468_s29 = sshll.u32 (!%p175_p2), %s771_s28, 6 }
  0x27   : > { %s181_s30 = scalar_lea.sflag (!%p175_p2), [#allocation3], %s771_s28  ;;  %s777_s4 = scalar_lea.vmem (!%p175_p2), [#allocation2], %s468_s29 }
  0x2b   : > { %629 = dma.done.wait (%p734_p8), %s181_s30, 1024  }
  0x2c   : > { %631 = vsyncadd (%p734_p8), %s181_s30, 4294966272  ;;  %v663_v0 = vmov 0   ;;  %v287_v1 = vld [vmem:[%s872_s1 + $0x10] sm:$0xff]  ;;  %v285_v2 = vld [vmem:[%s872_s1] sm:$0xff]  ;;  %s476_s8 = sshll.u32 %s650_s15, 10  ;;  %s358_s10 = scalar_lea.sflag [#allocation4], %s771_s28 }
  0x2d   : > { %545 = vset.pattern.permute.xlu1 %v663_v0  ;;  %544 = vset.pattern.permute.xlu0 %v663_v0  ;;  %v288_v3 = vld [vmem:[%s872_s1 + $0x18] sm:$0xff]  ;;  %v286_v4 = vld [vmem:[%s872_s1 + $0x8] sm:$0xff]  ;;  %v317_v6 = vld [vmem:[%s873_s2] sm:$0xff]  ;;  %s823_s15 = scalar_lea.hbm %s874_s3, %s476_s8  ;;  %s664_s11 = smov [#allocation5]  }
  0x2e   : > { %301 = vperm.xlu1 %545, %v287_v1   ;;  %291 = vperm.xlu0 %544, %v285_v2   ;;  %v318_v5 = vld [vmem:[%s873_s2 + $0x8] sm:$0xff]  ;;  %v320_v7 = vld [vmem:[%s873_s2 + $0x18] sm:$0xff]  ;;  %v319_v8 = vld [vmem:[%s873_s2 + $0x10] sm:$0xff]  ;;  %s582_s18 = sshll.u32 %s664_s11, 4  ;;  %s583_s18 = int_to_ptr.vmem [resolvable:$false] %s582_s18 }
  0x2f   : > { %v209_v9 = vld [vmem:[%s777_s4] sm:$0xff]  ;;  %v211_v10 = vld [vmem:[%s777_s4 + $0x10] sm:$0xff]  ;;  %v210_v11 = vld [vmem:[%s777_s4 + $0x8] sm:$0xff]  ;;  %s584_s19 = scalar_lea.vmem %s583_s18, 2048 }
  0x30   : > { %v212_v12 = vld [vmem:[%s777_s4 + $0x18] sm:$0xff]  ;;  %v217_v13 = vadd.f32 %v211_v10, %v209_v9  ;;  %v213_v14 = vld [vmem:[%s777_s4 + $0x20] sm:$0xff]  ;;  %v214_v16 = vld [vmem:[%s777_s4 + $0x28] sm:$0xff] }
  0x31   : > { %v226_v15 = vadd.f32 %v212_v12, %v210_v11  ;;  %v215_v18 = vld [vmem:[%s777_s4 + $0x30] sm:$0xff]  ;;  %v216_v20 = vld [vmem:[%s777_s4 + $0x38] sm:$0xff]  ;;  %s206_s4 = scalar_lea.vmem [#allocation5], %s468_s29 }
  0x32   : > { %306 = vperm.xlu1 %545, %v288_v3   ;;  %296 = vperm.xlu0 %544, %v286_v4   ;;  %v218_v17 = vadd.f32 %v217_v13, %v213_v14  ;;  %s373_s7 = sshll.u32 %s206_s4, 4  ;;  %s818_s7 = int_to_ptr.vmem [resolvable:$true] %s373_s7 }
  0x33   : > { %v227_v19 = vadd.f32 %v226_v15, %v214_v16  ;;  %s578_s24 = scalar_lea.vmem %s818_s7, 1024  ;;  %p585_p1 = scmp.lt.s32.totalorder %s818_s7, %s583_s18 }
  0x34   : > { %v219_v21 = vadd.f32 %v218_v17, %v215_v18  ;;  %p579_p8 = scmp.ne.s32.totalorder %s818_s7, %s578_s24  ;;  %p586_p3 = scmp.lt.s32.totalorder %s584_s19, %s578_s24 }
  0x35   : > { %v228_v22 = vadd.f32 %v227_v19, %v216_v20 }
  0x36   : > { %328 = vperm.xlu1 %545, %v318_v5   ;;  %323 = vperm.xlu0 %544, %v317_v6   ;;  %v220_v23 = vrot.slane %v219_v21, 4  ;;  %p580_p12 = pnand %p579_p8, %p738_p9  ;;  %p587_p5 = por %p586_p3, %p585_p1 }
  0x37   : > { %v229_v24 = vrot.slane %v228_v22, 4 }
  0x38   : > { %v221_v25 = vadd.f32 %v220_v23, %v219_v21  ;;  %p581_p0 = pneg %p580_p12 }
  0x39   : > { %v230_v26 = vadd.f32 %v229_v24, %v228_v22 }
  0x3a   : > { %338 = vperm.xlu1 %545, %v320_v7   ;;  %333 = vperm.xlu0 %544, %v319_v8   ;;  %v222_v27 = vrot.slane %v221_v25, 2  ;;  %p588_p6 = pnand %p587_p5, %p581_p0 }
  0x3b   : > { %v231_v28 = vrot.slane %v230_v26, 2 }
  0x3c   : > { %v223_v29 = vadd.f32 %v222_v27, %v221_v25 }
  0x3d   : > { %v232_v30 = vadd.f32 %v231_v28, %v230_v26 }
  0x3e   : > { %v224_v31 = vrot.slane %v223_v29, 1 }
  0x3f   : > { %v233_v32 = vrot.slane %v232_v30, 1 }
  0x40   : > { %v225_v33 = vadd.f32 %v224_v31, %v223_v29 }
  0x41   : > { %v234_v34 = vadd.f32 %v233_v32, %v232_v30 }
  0x42   : > { %v235_v35 = vmul.f32 0.03125, %v225_v33 }
  0x43   : > { %v236_v36 = vmul.f32 0.03125, %v234_v34 }
  0x44   : > { %v237_v37 = vsub.f32 %v209_v9, %v235_v35  ;;  %v239_v38 = vsub.f32 %v211_v10, %v235_v35  ;;  %v241_v41 = vsub.f32 %v213_v14, %v235_v35  ;;  %v243_v47 = vsub.f32 %v215_v18, %v235_v35 }
  0x45   : > { %v238_v39 = vsub.f32 %v210_v11, %v236_v36  ;;  %v240_v40 = vsub.f32 %v212_v12, %v236_v36  ;;  %v242_v44 = vsub.f32 %v214_v16, %v236_v36  ;;  %v244_v50 = vsub.f32 %v216_v20, %v236_v36 }
  0x46   : > { %v245_v42 = vmul.f32 %v237_v37, %v237_v37  ;;  %v247_v43 = vmul.f32 %v239_v38, %v239_v38  ;;  %v249_v48 = vmul.f32 %v241_v41, %v241_v41  ;;  %v251_v53 = vmul.f32 %v243_v47, %v243_v47 }
  0x47   : > { %v246_v45 = vmul.f32 %v238_v39, %v238_v39  ;;  %v248_v46 = vmul.f32 %v240_v40, %v240_v40  ;;  %v250_v51 = vmul.f32 %v242_v44, %v242_v44  ;;  %v252_v55 = vmul.f32 %v244_v50, %v244_v50 }
  0x48   : > { %v253_v49 = vadd.f32 %v247_v43, %v245_v42 }
  0x49   : > { %v262_v52 = vadd.f32 %v248_v46, %v246_v45 }
  0x4a   : > { %v254_v54 = vadd.f32 %v253_v49, %v249_v48 }
  0x4b   : > { %v263_v56 = vadd.f32 %v262_v52, %v250_v51 }
  0x4c   : > { %v255_v57 = vadd.f32 %v254_v54, %v251_v53 }
  0x4d   : > { %v264_v58 = vadd.f32 %v263_v56, %v252_v55 }
  0x4e   : > { %v256_v59 = vrot.slane %v255_v57, 4 }
  0x4f   : > { %v265_v60 = vrot.slane %v264_v58, 4 }
  0x50   : > { %v257_v61 = vadd.f32 %v256_v59, %v255_v57 }
  0x51   : > { %v266_v62 = vadd.f32 %v265_v60, %v264_v58 }
  0x52   : > { %v258_v63 = vrot.slane %v257_v61, 2 }
  0x53   : > { %v267_v0 = vrot.slane %v266_v62, 2 }
  0x54   : > { %v259_v1 = vadd.f32 %v258_v63, %v257_v61 }
  0x55   : > { %v268_v2 = vadd.f32 %v267_v0, %v266_v62 }
  0x56   : > { %v260_v3 = vrot.slane %v259_v1, 1 }
  0x57   : > { %v269_v4 = vrot.slane %v268_v2, 1 }
  0x58   : > { %v261_v5 = vadd.f32 %v260_v3, %v259_v1 }
  0x59   : > { %v270_v6 = vadd.f32 %v269_v4, %v268_v2 }
  0x5a   : > { %v271_v7 = vmul.f32 0.03125, %v261_v5 }
  0x5b   : > { %v272_v8 = vmul.f32 0.03125, %v270_v6 }
  0x5c   : > { %v273_v9 = vadd.f32 1e-06, %v271_v7 }
  0x5d   : > { %v274_v10 = vadd.f32 1e-06, %v272_v8 }
  0x5e   : > { %546 = vrsqrt.f32 %v273_v9 }
  0x5f   : > { %548 = vrsqrt.f32 %v274_v10 }
  0x6b   : > { %v547_v11 = vpop.eup %546 }
  0x6c   : > { %v549_v12 = vpop.eup %548  ;;  %v277_v15 = vmul.f32 %v547_v11, %v237_v37  ;;  %v279_v17 = vmul.f32 %v547_v11, %v239_v38  ;;  %v281_v21 = vmul.f32 %v547_v11, %v241_v41  ;;  %v283_v23 = vmul.f32 %v547_v11, %v243_v47 }
  0x6d   : > { %v278_v16 = vmul.f32 %v549_v12, %v238_v39  ;;  %v280_v18 = vmul.f32 %v549_v12, %v240_v40  ;;  %v282_v22 = vmul.f32 %v549_v12, %v242_v44  ;;  %v284_v24 = vmul.f32 %v549_v12, %v244_v50 }
  0xa9   : > { %v302_v13 = vpop.permute.xlu1 %301  ;;  %v292_v14 = vpop.permute.xlu0 %291 }
  0xaa   : > { %v309_v25 = vmul.f32 %v292_v14, %v277_v15  ;;  %v310_v26 = vmul.f32 %v292_v14, %v278_v16  ;;  %v313_v35 = vmul.f32 %v302_v13, %v281_v21  ;;  %v314_v36 = vmul.f32 %v302_v13, %v282_v22 }
  0xad   : > { %v307_v19 = vpop.permute.xlu1 %306  ;;  %v297_v20 = vpop.permute.xlu0 %296 }
  0xae   : > { %v311_v27 = vmul.f32 %v297_v20, %v279_v17  ;;  %v312_v28 = vmul.f32 %v297_v20, %v280_v18  ;;  %v315_v37 = vmul.f32 %v307_v19, %v283_v23  ;;  %v316_v38 = vmul.f32 %v307_v19, %v284_v24 }
  0xb1   : > { %v329_v29 = vpop.permute.xlu1 %328  ;;  %v324_v30 = vpop.permute.xlu0 %323 }
  0xb2   : > { %v343_v31 = vadd.f32 %v329_v29, %v311_v27  ;;  %v344_v32 = vadd.f32 %v329_v29, %v312_v28  ;;  %v341_v33 = vadd.f32 %v324_v30, %v309_v25  ;;  %v342_v34 = vadd.f32 %v324_v30, %v310_v26 }
  0xb4   : > { %351 = vst [vmem:[%s206_s4 + $0x10] sm:$0xff] %v343_v31  ;;  %352 = vst [vmem:[%s206_s4 + $0x18] sm:$0xff] %v344_v32 }
  0xb5   : > { %349 = vst [vmem:[%s206_s4] sm:$0xff] %v341_v33  ;;  %350 = vst [vmem:[%s206_s4 + $0x8] sm:$0xff] %v342_v34  ;;  %v339_v39 = vpop.permute.xlu1 %338  ;;  %v334_v40 = vpop.permute.xlu0 %333 }
  0xb6   : > { %v347_v41 = vadd.f32 %v339_v39, %v315_v37  ;;  %v348_v42 = vadd.f32 %v339_v39, %v316_v38  ;;  %v345_v43 = vadd.f32 %v334_v40, %v313_v35  ;;  %v346_v44 = vadd.f32 %v334_v40, %v314_v36 }
  0xb8   : > { %355 = vst [vmem:[%s206_s4 + $0x30] sm:$0xff] %v347_v41  ;;  %356 = vst [vmem:[%s206_s4 + $0x38] sm:$0xff] %v348_v42 }
  0xb9   : > { %353 = vst [vmem:[%s206_s4 + $0x20] sm:$0xff] %v345_v43  ;;  %354 = vst [vmem:[%s206_s4 + $0x28] sm:$0xff] %v346_v44 }
  0xba   : > { %591 = shalt.err (!%p588_p6)
}
  0xbb   : > { %s592_s21 = scalar_lea.hbm %s823_s15, 1024  ;;  %s596_s30 = scalar_lea.hbm %s874_s3, 2048 }
  0xbc   : > { %p593_p7 = scmp.ne.s32.totalorder %s823_s15, %s592_s21  ;;  %p597_p13 = scmp.lt.s32.totalorder %s823_s15, %s874_s3 }
  0xbd   : > { %p598_p2 = scmp.lt.s32.totalorder %s596_s30, %s592_s21 }
  0xbe   : > { %p594_p10 = pnand %p593_p7, %p738_p9 }
  0xbf   : > { %p599_p8 = por %p598_p2, %p597_p13 }
  0xc0   : > { %p595_p4 = pneg %p594_p10 }
  0xc2   : > { %p600_p12 = pnand %p599_p8, %p595_p4 }
  0xc4   : > { %603 = shalt.err (!%p600_p12)
}
  0xc5   : > { %s665_s4 = smov 256   ;;  %s666_s8 = smov 16  }
  0xc6   : > { %479 = dma.vmem_to_hbm [thread:$0]  (%p738_p9), %s818_s7, 1024, %s823_s15, %s358_s10, %s665_s4, %s665_s4, %s666_s8  }
  0xc7 PF: > { %s388_s29 = sand.u32 1, %s638_s12   ;;  %p880_p0 = scmp.ge.s32.totalorder %s658_s17, 2 }
  0xc8   : > { %s389_s9 = scalar_lea.sflag [#allocation4], %s388_s29 }
  0xc9   : > { %p486_p1 = pnand %p880_p0, %p745_p11 }
  0xcb   : > { %p487_p3 = pneg %p486_p1 }
  0xcd   : > { %633 = dma.done.wait (%p487_p3), %s389_s9, 1024  }
  0xce   : > { %635 = vsyncadd (%p487_p3), %s389_s9, 4294966272  ;;  %s19_s17 = sadd.s32 1, %s658_s17   ;;  %s881_s12 = smov %s642_s13 }
  0xcf   : > { %p16_p5 = scmp.ge.s32.totalorder %s19_s17, 4   ;;  %s882_s13 = smov %s646_s14 }
  0xd0   : > { %s883_s14 = smov %s743_s26  ;;  %s884_s15 = smov %s654_s16 }
  0xd1   : > { %s885_s16 = smov %s887_s20  ;;  %18 = sbr.rel (!%p16_p5) target bundleno = 6 (0x6), region = 77 }
  0xd6   :  { %394 = vsyncpa [#allocation3], 1 }
  0xd7   :  { %396 = vsyncpa [#allocation3 + $0x1], 1 }
  0xd8   :  { %397 = vsyncpa [#allocation4], 1 }
  0xd9   :  { %399 = vsyncpa [#allocation4 + $0x1], 1 }

</bundles_post_ra>
